<compile_context>
chip_gen: v6e
topology: v6e:2x2x1
jax: 0.10.0
libtpu: 0.0.40
codegen_flags: <defaults>
</compile_context>

<pallas_src>
import functools
import math

import jax
import jax.numpy as jnp
from jax import lax
from jax.experimental import pallas as pl
from jax.experimental.pallas import tpu as pltpu


def lorentz_linear_kernel(scale_ref, x_ref, w_ref, b_ref, o_ref, *, inv_c):
    exp_scale = scale_ref[0]                        # scalar, read from SMEM

    x = x_ref[...]                                  # (T, F_in), native dtype
    w = w_ref[...]                                  # (F_out, F_in), resident
    b = b_ref[...].astype(jnp.float32)              # (1, F_out)

    # h = x @ W^T + b  — MXU, f32 accumulation, no pre-transposed weight copy.
    h = lax.dot_general(
        x, w,
        dimension_numbers=(((1,), (1,)), ((), ())),
        preferred_element_type=jnp.float32,
    ) + b                                           # (T, F_out) f32

    h0 = h[:, 0:1]                                  # time pre-activation (T, 1)
    time = jax.nn.sigmoid(h0) * exp_scale + 1.1     # (T, 1), EUP exp

    # ||h[:, 1:]||^2 reuses the single full-row reduction.
    sq_narrow = jnp.sum(h * h, axis=-1, keepdims=True) - h0 * h0
    denom = jnp.maximum(sq_narrow, 1e-8)            # clamp_min(1e-8)
    s = (time * time - inv_c) / denom               # (T, 1) column math only
    sqrt_s = jnp.sqrt(s)                            # (T, 1)

    # out[:, 0] = time ; out[:, 1:] = h[:, 1:] * sqrt(s)  (lane-select, no concat)
    col = lax.broadcasted_iota(jnp.int32, h.shape, dimension=1)
    out = jnp.where(col == 0, time, h * sqrt_s)
    o_ref[...] = out.astype(o_ref.dtype)


def lorentz_linear(x, weight, bias, scale_param, c, *,
                   dropout_key=None, dropout=0.1, training=True, tile_n=256):
    """x: (..., F_in); weight: (F_out, F_in); bias: (F_out,); scale_param: scalar (log-scale)."""
    orig_shape = x.shape
    f_in = orig_shape[-1]
    f_out = weight.shape[0]
    x2 = x.reshape(-1, f_in)
    n = x2.shape[0]

    # Dropout on the *input* (as in the PyTorch module) — RNG glue stays in JAX.
    if training and dropout > 0.0 and dropout_key is not None:
        keep = jax.random.bernoulli(dropout_key, 1.0 - dropout, x2.shape)
        x2 = jnp.where(keep, x2 / (1.0 - dropout), jnp.zeros_like(x2))

    exp_scale = jnp.exp(scale_param).reshape((1,)).astype(jnp.float32)
    w = weight.astype(x2.dtype)
    b2 = bias.reshape(1, f_out)

    tile_n = max(8, min(tile_n, n))
    grid = (pl.cdiv(n, tile_n),)

    kernel = functools.partial(lorentz_linear_kernel, inv_c=1.0 / float(c))

    out = pl.pallas_call(
        kernel,
        out_shape=jax.ShapeDtypeStruct((n, f_out), x2.dtype),
        grid=grid,
        in_specs=[
            pl.BlockSpec(memory_space=pltpu.MemorySpace.SMEM),   # exp(scale), scalar
            pl.BlockSpec((tile_n, f_in), lambda i: (i, 0)),      # x: row-tiled, pipelined
            pl.BlockSpec((f_out, f_in), lambda i: (0, 0)),       # weight: resident in VMEM
            pl.BlockSpec((1, f_out), lambda i: (0, 0)),          # bias: resident
        ],
        out_specs=pl.BlockSpec((tile_n, f_out), lambda i: (i, 0)),
        compiler_params=pltpu.CompilerParams(
            dimension_semantics=("parallel",),                   # megacore sharding (v7x)
        ),
    )(exp_scale, x2, w, b2)

    return out.reshape(orig_shape[:-1] + (f_out,))


if __name__ == "__main__":
    in_features = 16
    out_features = 32
    n = 8
    c = 1.0
    dropout = 0.1
    scale_init = math.log(30.0)

    key = jax.random.PRNGKey(0)
    k_x, k_w, k_drop = jax.random.split(key, 3)

    # reset_parameters(): uniform(-stdv, stdv), zero column 0, bias = 0
    stdv = 1.0 / math.sqrt(out_features)
    weight = jax.random.uniform(
        k_w, (out_features, in_features), jnp.float32, -stdv, stdv
    )
    weight = weight.at[:, 0].set(0.0)
    bias = jnp.zeros((out_features,), jnp.float32)
    scale_param = jnp.asarray(scale_init, jnp.float32)

    x = 0.1 * jax.random.normal(k_x, (n, in_features), jnp.float32)

    out = lorentz_linear(x, weight, bias, scale_param, c,
                         dropout_key=k_drop, dropout=dropout, training=True)
    jax.block_until_ready(out)
    assert out.shape == (n, out_features)
    assert bool(jnp.all(jnp.isfinite(out)))
    # Lorentz constraint sanity: time^2 - ||space||^2 ~= 1/c for every row.
    lhs = out[:, :1] ** 2 - jnp.sum(out[:, 1:] ** 2, axis=-1, keepdims=True)
    assert bool(jnp.all(jnp.abs(lhs - 1.0 / c) < 1e-3))
    print("KERNEL_OK")
</pallas_src>

<mosaic_0001>
module attributes {stable_mosaic.version = 11 : i64} {
  func.func @lorentz_linear_kernel(%arg0: i32, %arg1: memref<1xf32, #tpu.memory_space<smem>>, %arg2: memref<8x16xf32, #tpu.memory_space<vmem>>, %arg3: memref<32x16xf32, #tpu.memory_space<vmem>>, %arg4: memref<1x32xf32, #tpu.memory_space<vmem>>, %arg5: memref<8x32xf32, #tpu.memory_space<vmem>>) attributes {dimension_semantics = [#tpu.dimension_semantics<parallel>], iteration_bounds = array<i64: 1>, scalar_prefetch = 0 : i64, scratch_operands = 0 : i64, tpu.core_type = #tpu.core_type<tc>, window_params = [{transform_indices = @transform_0, window_bounds = array<i64: 1>}, {transform_indices = @transform_1, window_bounds = array<i64: 8, 16>}, {pipeline_mode = #tpu.pipeline_mode<synchronous>, transform_indices = @transform_2, window_bounds = array<i64: 32, 16>}, {pipeline_mode = #tpu.pipeline_mode<synchronous>, transform_indices = @transform_3, window_bounds = array<i64: 1, 32>}, {transform_indices = @transform_4, window_bounds = array<i64: 8, 32>}]} {
    %c0 = arith.constant 0 : index
    %0 = memref.load %arg1[%c0] : memref<1xf32, #tpu.memory_space<smem>>
    %c0_0 = arith.constant 0 : index
    %c0_1 = arith.constant 0 : index
    %1 = vector.load %arg2[%c0_0, %c0_1] : memref<8x16xf32, #tpu.memory_space<vmem>>, vector<8x16xf32>
    %c0_2 = arith.constant 0 : index
    %c0_3 = arith.constant 0 : index
    %2 = vector.load %arg3[%c0_2, %c0_3] : memref<32x16xf32, #tpu.memory_space<vmem>>, vector<32x16xf32>
    %c0_4 = arith.constant 0 : index
    %c0_5 = arith.constant 0 : index
    %3 = vector.load %arg4[%c0_4, %c0_5] : memref<1x32xf32, #tpu.memory_space<vmem>>, vector<1x32xf32>
    %cst = arith.constant dense<0.000000e+00> : vector<8x32xf32>
    %4 = tpu.matmul %1, %2, %cst {dimension_numbers = #tpu.dot_dimension_numbers<[1], [1], [0], [0], [0, 0, 1, 0], [], []>} : vector<8x16xf32>, vector<32x16xf32>, vector<8x32xf32> -> vector<8x32xf32>
    %5 = vector.broadcast %3 : vector<1x32xf32> to vector<8x32xf32>
    %6 = arith.addf %4, %5 : vector<8x32xf32>
    %7 = vector.extract_strided_slice %6 {offsets = [0, 0], sizes = [8, 1], strides = [1, 1]} : vector<8x32xf32> to vector<8x1xf32>
    %8 = arith.negf %7 : vector<8x1xf32>
    %9 = math.exp %8 : vector<8x1xf32>
    %cst_6 = arith.constant 1.000000e+00 : f32
    %10 = vector.broadcast %cst_6 : f32 to vector<8x1xf32>
    %11 = arith.addf %10, %9 : vector<8x1xf32>
    %12 = arith.divf %10, %11 : vector<8x1xf32>
    %13 = vector.broadcast %0 : f32 to vector<8x1xf32>
    %14 = arith.mulf %12, %13 : vector<8x1xf32>
    %cst_7 = arith.constant 1.100000e+00 : f32
    %15 = vector.broadcast %cst_7 : f32 to vector<8x1xf32>
    %16 = arith.addf %14, %15 : vector<8x1xf32>
    %17 = arith.mulf %6, %6 : vector<8x32xf32>
    %cst_8 = arith.constant dense<0.000000e+00> : vector<8xf32>
    %18 = vector.multi_reduction <add>, %17, %cst_8 [1] : vector<8x32xf32> to vector<8xf32>
    %19 = vector.shape_cast %18 : vector<8xf32> to vector<8x1xf32>
    %20 = arith.mulf %7, %7 : vector<8x1xf32>
    %21 = arith.subf %19, %20 : vector<8x1xf32>
    %cst_9 = arith.constant 9.99999993E-9 : f32
    %22 = vector.broadcast %cst_9 : f32 to vector<8x1xf32>
    %23 = arith.maximumf %21, %22 : vector<8x1xf32>
    %24 = arith.mulf %16, %16 : vector<8x1xf32>
    %cst_10 = arith.constant 1.000000e+00 : f32
    %25 = vector.broadcast %cst_10 : f32 to vector<8x1xf32>
    %26 = arith.subf %24, %25 : vector<8x1xf32>
    %27 = arith.divf %26, %23 : vector<8x1xf32>
    %28 = math.sqrt %27 : vector<8x1xf32>
    %29 = tpu.iota {dimensions = array<i32: 1>} : vector<8x32xi32>
    %c0_i32 = arith.constant 0 : i32
    %30 = vector.broadcast %c0_i32 : i32 to vector<8x32xi32>
    %31 = arith.cmpi eq, %29, %30 : vector<8x32xi32>
    %32 = vector.broadcast %28 : vector<8x1xf32> to vector<8x32xf32>
    %33 = arith.mulf %6, %32 : vector<8x32xf32>
    %34 = vector.shape_cast %16 : vector<8x1xf32> to vector<8x1xf32>
    %35 = vector.broadcast %34 : vector<8x1xf32> to vector<8x32xf32>
    %36 = arith.select %31, %35, %33 : vector<8x32xi1>, vector<8x32xf32>
    %c0_11 = arith.constant 0 : index
    %c0_12 = arith.constant 0 : index
    %37 = vector.load %arg5[%c0_11, %c0_12] : memref<8x32xf32, #tpu.memory_space<vmem>>, vector<8x32xf32>
    tpu.vector_store %arg5[%c0_11, %c0_12], %36 {strides = array<i32>} : memref<8x32xf32, #tpu.memory_space<vmem>>, vector<8x32xf32>,
    return
  }
  func.func @transform_0(%arg0: i32) -> i32 {
    %c0_i32 = arith.constant 0 : i32
    %c0_i32_0 = arith.constant 0 : i32
    return %c0_i32 : i32
  }
  func.func @transform_1(%arg0: i32) -> (i32, i32) {
    %c0_i32 = arith.constant 0 : i32
    %c0_i32_0 = arith.constant 0 : i32
    return %arg0, %c0_i32 : i32, i32
  }
  func.func @transform_2(%arg0: i32) -> (i32, i32) {
    %c0_i32 = arith.constant 0 : i32
    %c0_i32_0 = arith.constant 0 : i32
    %c0_i32_1 = arith.constant 0 : i32
    return %c0_i32, %c0_i32_0 : i32, i32
  }
  func.func @transform_3(%arg0: i32) -> (i32, i32) {
    %c0_i32 = arith.constant 0 : i32
    %c0_i32_0 = arith.constant 0 : i32
    %c0_i32_1 = arith.constant 0 : i32
    return %c0_i32, %c0_i32_0 : i32, i32
  }
  func.func @transform_4(%arg0: i32) -> (i32, i32) {
    %c0_i32 = arith.constant 0 : i32
    %c0_i32_0 = arith.constant 0 : i32
    return %arg0, %c0_i32 : i32, i32
  }
}

</mosaic_0001>

<bundles_post_ra>
// kernel: tpu_custom_call.1
= control target key start
LH: loop header
LB: loop body
LE: loop exit
PB: predicated region body
PF: predicated region fallthrough
CT: control target
= control target key end

     0   :  { %vm32_vm0 = vcmask 130048   ;;  %v235_v1 = vmov 0.0   ;;  %vm236_vm1 = vmmov 0   ;;  %s295_s0 = inlined_call_operand.<no memory space> [shape: f32[1], index: 0, kind: input, shape index: {}]   ;;  %s296_s1 = inlined_call_operand.vmem [shape: f32[8,16], index: 1, kind: input, shape index: {}]   ;;  %s297_s2 = inlined_call_operand.vmem [shape: f32[32,16], index: 2, kind: input, shape index: {}]   ;;  %s298_s3 = inlined_call_operand.vmem [shape: f32[1,32], index: 3, kind: input, shape index: {}]   ;;  %s299_s4 = inlined_call_operand.hbm [shape: f32[8,32], index: 4, kind: output, shape index: {}]  }
   0x1   :  { %v24_v0 = vld [vmem:[%s297_s2 + $0x18] sm:$0xff]  ;;  %188 = vmatprep.subr.mxu0 %v235_v1  ;;  %196 = vmatprep.mubr.msk.f32.mxu0 %vm236_vm1, %v235_v1 }
   0x2   :  { %189 = vmatpush3.xpose.msk.msra.mxu0 %vm32_vm0, %v24_v0 }
   0x3   :  { %10 = vsyncpa [#allocation4], 0  ;;  %190 = vmatprep.subr.mxu0 %v235_v1  ;;  %v23_v2 = vld [vmem:[%s297_s2 + $0x10] sm:$0xff]  ;;  %v22_v3 = vld [vmem:[%s297_s2 + $0x8] sm:$0xff]  ;;  %v237_v6 = vmov 0   ;;  %vm128_vm2 = vcmask 261120   ;;  %v124_v16 = vstv %s295_s0  ;;  %v145_v32 = vlaneseq }
   0x4   :  { %v21_v4 = vld [vmem:[%s297_s2] sm:$0xff]  ;;  %204 = vset.pattern.permute.xlu1 %v237_v6  ;;  %203 = vset.pattern.permute.xlu0 %v237_v6  ;;  %s238_s0 = smov [#allocation3]  }
   0x5   :  { %v20_v5 = vld [vmem:[%s296_s1] sm:$0xff]  ;;  %v146_v33 = vand.u32 127, %v145_v32 }
   0x6   :  { %191 = vmatpush3.xpose.msk.msra.mxu0 %vm32_vm0, %v23_v2  ;;  %v175_v7 = vld [vmem:[%s298_s3] ss:$0 sm:$0xff]  ;;  %s167_s3 = sshll.u32 %s238_s0, 4  ;;  %s168_s3 = int_to_ptr.vmem [resolvable:$true] %s167_s3 }
   0x7   :  { %192 = vmatprep.subr.mxu0 %v235_v1  ;;  %vm147_vm5 = vcmp.eq.s32.totalorder %v146_v33, 0  ;;  %s213_s27 = scalar_lea.vmem %s168_s3, 128  ;;  %p218_p1 = scmp.lt.s32.totalorder %s168_s3, %s168_s3 }
   0x8   :  { %p214_p0 = scmp.ne.s32.totalorder %s168_s3, %s213_s27  ;;  %p219_p2 = scmp.lt.s32.totalorder %s213_s27, %s213_s27 }
   0xa   :  { %193 = vmatpush3.xpose.msk.msra.mxu0 %vm32_vm0, %v22_v3  ;;  %p220_p3 = por %p219_p2, %p218_p1 }
   0xb   :  { %194 = vmatprep.subr.mxu0 %v235_v1 }
   0xc   :  { %p221_p4 = pnand %p220_p3, %p214_p0 }
   0xe   :  { %195 = vmatpush3.xpose.msk.msra.mxu0 %vm32_vm0, %v21_v4 }
  0x11   :  { %197 = vmatmul.mubr.msk.f32.vlgmr.msra.gmra.mxu0 %vm32_vm0, %v20_v5 }
  0xd1   :  { %v114_v8 = vpop.f32.mrf.mxu0 }
  0xd2   :  { %v115_v9 = vadd.f32 %v175_v7, %v114_v8 }
  0xd3   :  { %v198_v10 = vpop.f32.mrf.mxu0 }
  0xd4   :  { %v181_v11 = vmul.f32 -1.442695, %v115_v9  ;;  %v127_v12 = vmul.f32 %v115_v9, %v115_v9 }
  0xd6   :  { %205 = vpow2.f32 %v181_v11  ;;  %v129_v13 = vsel %vm128_vm2, %v127_v12, 0.0 }
  0xd7   :  { %130 = vadd.xlane.f32.xlu0 %v129_v13 }
  0xe3   :  { %v206_v14 = vpop.eup %205 }
  0xe4   :  { %v121_v15 = vadd.f32 1.0, %v206_v14 }
  0xe6   :  { %207 = vrcp.f32 %v121_v15 }
  0xf3   :  { %v208_v17 = vpop.eup %207 }
  0xf4   :  { %v125_v18 = vmul.f32 %v208_v17, %v124_v16 }
  0xf6   :  { %v126_v19 = vadd.f32 1.1, %v125_v18 }
  0xf8   :  { %156 = vperm.xlu1 %204, %v126_v19   ;;  %v134_v23 = vmul.f32 %v126_v19, %v126_v19 }
  0xfa   :  { %v182_v24 = vadd.f32 -1.0, %v134_v23 }
 0x160   :  { %v131_v20 = vpop.xlane.xlu0 %130 }
 0x161   :  { %v132_v21 = vsub.f32 %v131_v20, %v127_v12 }
 0x163   :  { %v133_v22 = vmax.f32 %v132_v21, 1e-08 }
 0x165   :  { %209 = vrcp.f32 %v133_v22 }
 0x172   :  { %v210_v25 = vpop.eup %209 }
 0x173   :  { %v137_v26 = vmul.f32 %v210_v25, %v182_v24  ;;  %v157_v36 = vpop.permute.xlu1 %156 }
 0x175   :  { %211 = vrsqrt.f32 %v137_v26  ;;  %vm140_vm3 = vcmp.eq.f32.partialorder %v137_v26, inf  ;;  %v143_v29 = vand.u32 2147483648, %v137_v26  ;;  %vm142_vm4 = vcmp.eq.f32.partialorder %v137_v26, 0.0 }
 0x182   :  { %v212_v27 = vpop.eup %211 }
 0x183   :  { %v139_v28 = vmul.f32 %v212_v27, %v137_v26 }
 0x185   :  { %v141_v30 = vsel %vm140_vm3, %v137_v26, %v139_v28 }
 0x186   :  { %v144_v31 = vsel %vm142_vm4, %v143_v29, %v141_v30 }
 0x187   :  { %150 = vperm.xlu0 %203, %v144_v31  }
 0x202   :  { %v151_v34 = vpop.permute.xlu0 %150 }
 0x203   :  { %v153_v35 = vmul.f32 %v151_v34, %v115_v9 }
 0x205   :  { %v159_v37 = vsel %vm147_vm5, %v157_v36, %v153_v35 }
 0x206   :  { %160 = vst.msk [vmem:[#allocation3] sm:$0xff] %vm128_vm2, %v159_v37 }
 0x207   :  { %224 = shalt.err (!%p221_p4)
}
 0x208   :  { %170 = dma.vmem_to_hbm [thread:$0]  %s168_s3, 128, %s299_s4, [#allocation4]  }
 0x209   :  { %233 = dma.done.wait [#allocation4], 128  }
 0x20a   :  { %234 = vsyncadd [#allocation4], 4294967168 }
 0x20b   :  { %174 = vsyncpa [#allocation4], 1 }

</bundles_post_ra>
